<compile_context>
chip_gen: v5e
topology: v5e:2x2
jax: 0.10.0
libtpu: 0.0.40
codegen_flags: <defaults>
</compile_context>

<pallas_src>
import jax
import jax.numpy as jnp
from jax import lax
from jax.experimental import pallas as pl
from jax.experimental.pallas import tpu as pltpu


def cpc_kernel(x_ref, y_ref, w_ref, b_ref, o_ref):
    x = x_ref[...].astype(jnp.float32)     # (B, Dx)
    y = y_ref[...].astype(jnp.float32)     # (B, Dy)
    w = w_ref[...].astype(jnp.float32)     # (Dx, Dy)  untransposed nn.Linear weight
    b = b_ref[...].astype(jnp.float32)     # (1, Dx)

    # Linear: x_pred = y @ W.T + b. Contract y dim 1 with w dim 1 — the MXU
    # consumes the transposed RHS directly, no transpose materialized.
    x_pred = lax.dot_general(
        y, w, (((1,), (1,)), ((), ())),
        preferred_element_type=jnp.float32) + b            # (B, Dx)

    # Row L2-normalization (dim=1 in PyTorch == feature/lane axis here):
    # rsqrt + mul instead of sqrt + div. Tiny clamp only guards exact-zero rows.
    xp_ss = jnp.sum(x_pred * x_pred, axis=-1, keepdims=True)
    x_pred = x_pred * lax.rsqrt(jnp.maximum(xp_ss, 1e-24))
    x_ss = jnp.sum(x * x, axis=-1, keepdims=True)
    xn = x * lax.rsqrt(jnp.maximum(x_ss, 1e-24))

    # Pairwise cosine scores: another transposed-RHS contraction (no x_pred.T).
    logits = lax.dot_general(
        xn, x_pred, (((1,), (1,)), ((), ())),
        preferred_element_type=jnp.float32)                # (B, B)

    # Positive scores = diagonal of logits (cheap (B,B) select + B-wide reduce).
    bsz = logits.shape[0]
    rows = lax.broadcasted_iota(jnp.int32, (bsz, bsz), 0)
    cols = lax.broadcasted_iota(jnp.int32, (bsz, bsz), 1)
    pos = jnp.sum(jnp.where(rows == cols, logits, 0.0),
                  axis=-1, keepdims=True)                  # (B, 1)

    # Negative scores: numerically stable logsumexp over the key axis.
    m = jnp.max(logits, axis=-1, keepdims=True)
    neg = m + jnp.log(jnp.sum(jnp.exp(logits - m), axis=-1, keepdims=True))  # (B, 1)

    o_ref[0, 0] = -jnp.mean(pos - neg)


def cpc_forward(x, y, w, b):
    """x: (B, x_size), y: (B, y_size), w: (x_size, y_size), b: (x_size,)"""
    B, Dx = x.shape
    _, Dy = y.shape
    b2 = b.reshape(1, Dx)

    flops = 2 * B * Dy * Dx + 2 * B * B * Dx
    bytes_accessed = 4 * (x.size + y.size + w.size + b2.size + 1)
    transcendentals = B * B + 3 * B          # exp(B*B) + rsqrt(2B) + log(B)

    out = pl.pallas_call(
        cpc_kernel,
        out_shape=jax.ShapeDtypeStruct((1, 1), jnp.float32),
        in_specs=[
            pl.BlockSpec(memory_space=pltpu.VMEM),   # x
            pl.BlockSpec(memory_space=pltpu.VMEM),   # y
            pl.BlockSpec(memory_space=pltpu.VMEM),   # w (Dx, Dy), untransposed
            pl.BlockSpec(memory_space=pltpu.VMEM),   # bias (1, Dx)
        ],
        out_specs=pl.BlockSpec(memory_space=pltpu.SMEM),
        cost_estimate=pl.CostEstimate(
            flops=flops,
            transcendentals=transcendentals,
            bytes_accessed=bytes_accessed),
    )(x, y, w, b2)
    return out[0, 0]


def cpc_reference(x, y, w, b):
    x = x.astype(jnp.float32)
    y = y.astype(jnp.float32)
    x_pred = y @ w.T.astype(jnp.float32) + b.astype(jnp.float32)
    x_pred = x_pred / jnp.linalg.norm(x_pred, axis=1, keepdims=True)
    xn = x / jnp.linalg.norm(x, axis=1, keepdims=True)
    pos = jnp.sum(xn * x_pred, axis=-1)
    neg = jax.scipy.special.logsumexp(xn @ x_pred.T, axis=-1)
    return -(pos - neg).mean()


if __name__ == "__main__":
    # Small, TPU-tile-friendly sizes: batch=8, x_size=128, y_size=128
    B, X_SIZE, Y_SIZE = 8, 128, 128

    key = jax.random.PRNGKey(0)
    kx, ky, kw, kb = jax.random.split(key, 4)

    x = jax.random.normal(kx, (B, X_SIZE), dtype=jnp.float32)
    y = jax.random.normal(ky, (B, Y_SIZE), dtype=jnp.float32)

    # Deterministic Linear(y_size -> x_size) init, matching nn.Linear default:
    # U(-1/sqrt(in_features), 1/sqrt(in_features))
    bound = 1.0 / (Y_SIZE ** 0.5)
    w = jax.random.uniform(kw, (X_SIZE, Y_SIZE), jnp.float32, -bound, bound)
    b = jax.random.uniform(kb, (X_SIZE,), jnp.float32, -bound, bound)

    nce = cpc_forward(x, y, w, b)
    jax.block_until_ready(nce)

    ref = cpc_reference(x, y, w, b)
    assert jnp.allclose(nce, ref, atol=1e-4, rtol=1e-4), (nce, ref)

    print("KERNEL_OK")
</pallas_src>

<mosaic_0001>
module attributes {stable_mosaic.version = 11 : i64} {
  func.func @cpc_kernel(%arg0: memref<8x128xf32, #tpu.memory_space<vmem>>, %arg1: memref<8x128xf32, #tpu.memory_space<vmem>>, %arg2: memref<128x128xf32, #tpu.memory_space<vmem>>, %arg3: memref<1x128xf32, #tpu.memory_space<vmem>>, %arg4: memref<1x1xf32, #tpu.memory_space<smem>>) attributes {dimension_semantics = [], scalar_prefetch = 0 : i64, scratch_operands = 0 : i64, tpu.core_type = #tpu.core_type<tc>} {
    %c0 = arith.constant 0 : index
    %c0_0 = arith.constant 0 : index
    %0 = vector.load %arg0[%c0, %c0_0] : memref<8x128xf32, #tpu.memory_space<vmem>>, vector<8x128xf32>
    %c0_1 = arith.constant 0 : index
    %c0_2 = arith.constant 0 : index
    %1 = vector.load %arg1[%c0_1, %c0_2] : memref<8x128xf32, #tpu.memory_space<vmem>>, vector<8x128xf32>
    %c0_3 = arith.constant 0 : index
    %c0_4 = arith.constant 0 : index
    %2 = vector.load %arg2[%c0_3, %c0_4] : memref<128x128xf32, #tpu.memory_space<vmem>>, vector<128x128xf32>
    %c0_5 = arith.constant 0 : index
    %c0_6 = arith.constant 0 : index
    %3 = vector.load %arg3[%c0_5, %c0_6] : memref<1x128xf32, #tpu.memory_space<vmem>>, vector<1x128xf32>
    %cst = arith.constant dense<0.000000e+00> : vector<8x128xf32>
    %4 = tpu.matmul %1, %2, %cst {dimension_numbers = #tpu.dot_dimension_numbers<[1], [1], [0], [0], [0, 0, 1, 0], [], []>} : vector<8x128xf32>, vector<128x128xf32>, vector<8x128xf32> -> vector<8x128xf32>
    %5 = vector.broadcast %3 : vector<1x128xf32> to vector<8x128xf32>
    %6 = arith.addf %4, %5 : vector<8x128xf32>
    %7 = arith.mulf %6, %6 : vector<8x128xf32>
    %cst_7 = arith.constant dense<0.000000e+00> : vector<8xf32>
    %8 = vector.multi_reduction <add>, %7, %cst_7 [1] : vector<8x128xf32> to vector<8xf32>
    %9 = vector.shape_cast %8 : vector<8xf32> to vector<8x1xf32>
    %cst_8 = arith.constant 1.000000e-24 : f32
    %10 = vector.broadcast %cst_8 : f32 to vector<8x1xf32>
    %11 = arith.maximumf %9, %10 : vector<8x1xf32>
    %12 = math.rsqrt %11 : vector<8x1xf32>
    %13 = vector.broadcast %12 : vector<8x1xf32> to vector<8x128xf32>
    %14 = arith.mulf %6, %13 : vector<8x128xf32>
    %15 = arith.mulf %0, %0 : vector<8x128xf32>
    %cst_9 = arith.constant dense<0.000000e+00> : vector<8xf32>
    %16 = vector.multi_reduction <add>, %15, %cst_9 [1] : vector<8x128xf32> to vector<8xf32>
    %17 = vector.shape_cast %16 : vector<8xf32> to vector<8x1xf32>
    %cst_10 = arith.constant 1.000000e-24 : f32
    %18 = vector.broadcast %cst_10 : f32 to vector<8x1xf32>
    %19 = arith.maximumf %17, %18 : vector<8x1xf32>
    %20 = math.rsqrt %19 : vector<8x1xf32>
    %21 = vector.broadcast %20 : vector<8x1xf32> to vector<8x128xf32>
    %22 = arith.mulf %0, %21 : vector<8x128xf32>
    %cst_11 = arith.constant dense<0.000000e+00> : vector<8x8xf32>
    %23 = tpu.matmul %22, %14, %cst_11 {dimension_numbers = #tpu.dot_dimension_numbers<[1], [1], [0], [0], [0, 0, 1, 0], [], []>} : vector<8x128xf32>, vector<8x128xf32>, vector<8x8xf32> -> vector<8x8xf32>
    %24 = tpu.iota {dimensions = array<i32: 0>} : vector<8x8xi32>
    %25 = tpu.iota {dimensions = array<i32: 1>} : vector<8x8xi32>
    %26 = arith.cmpi eq, %24, %25 : vector<8x8xi32>
    %cst_12 = arith.constant 0.000000e+00 : f32
    %27 = vector.broadcast %cst_12 : f32 to vector<8x8xf32>
    %28 = arith.select %26, %23, %27 : vector<8x8xi1>, vector<8x8xf32>
    %cst_13 = arith.constant dense<0.000000e+00> : vector<8xf32>
    %29 = vector.multi_reduction <add>, %28, %cst_13 [1] : vector<8x8xf32> to vector<8xf32>
    %30 = vector.shape_cast %29 : vector<8xf32> to vector<8x1xf32>
    %cst_14 = arith.constant dense<0xFF800000> : vector<8xf32>
    %31 = vector.multi_reduction <maximumf>, %23, %cst_14 [1] : vector<8x8xf32> to vector<8xf32>
    %32 = vector.shape_cast %31 : vector<8xf32> to vector<8x1xf32>
    %33 = vector.broadcast %32 : vector<8x1xf32> to vector<8x8xf32>
    %34 = arith.subf %23, %33 : vector<8x8xf32>
    %35 = math.exp %34 : vector<8x8xf32>
    %cst_15 = arith.constant dense<0.000000e+00> : vector<8xf32>
    %36 = vector.multi_reduction <add>, %35, %cst_15 [1] : vector<8x8xf32> to vector<8xf32>
    %37 = vector.shape_cast %36 : vector<8xf32> to vector<8x1xf32>
    %38 = math.log %37 : vector<8x1xf32>
    %39 = arith.addf %32, %38 : vector<8x1xf32>
    %40 = arith.subf %30, %39 : vector<8x1xf32>
    %41 = vector.shape_cast %40 : vector<8x1xf32> to vector<1x8x1xf32>
    %cst_16 = arith.constant dense<0.000000e+00> : vector<1xf32>
    %42 = vector.multi_reduction <add>, %41, %cst_16 [1, 2] : vector<1x8x1xf32> to vector<1xf32>
    %43 = vector.shape_cast %42 : vector<1xf32> to vector<1x1x1xf32>
    %44 = vector.extract %43[0, 0, 0] : f32 from vector<1x1x1xf32>
    %cst_17 = arith.constant 8.000000e+00 : f32
    %45 = arith.divf %44, %cst_17 : f32
    %cst_18 = arith.constant 0.000000e+00 : f32
    %46 = arith.subf %cst_18, %45 : f32
    %c0_19 = arith.constant 0 : index
    %c0_20 = arith.constant 0 : index
    %47 = memref.load %arg4[%c0_19, %c0_20] : memref<1x1xf32, #tpu.memory_space<smem>>
    memref.store %46, %arg4[%c0_19, %c0_20] : memref<1x1xf32, #tpu.memory_space<smem>>
    return
  }
}

</mosaic_0001>

<bundles_post_ra>
// kernel: tpu_custom_call.1
= control target key start
LH: loop header
LB: loop body
LE: loop exit
PB: predicated region body
PF: predicated region fallthrough
CT: control target
= control target key end

     0   :  { %9 = vsyncpa [#allocation3], 0  ;;  %s375_s0 = inlined_call_operand.hbm [shape: f32[8,128], index: 0, kind: input, shape index: {}]   ;;  %s376_s1 = inlined_call_operand.hbm [shape: f32[8,128], index: 1, kind: input, shape index: {}]   ;;  %s377_s2 = inlined_call_operand.hbm [shape: f32[128,128], index: 2, kind: input, shape index: {}]   ;;  %s378_s3 = inlined_call_operand.vmem [shape: f32[1,128], index: 3, kind: input, shape index: {}]   ;;  %s379_s4 = inlined_call_operand.hbm [shape: f32[1,1], index: 4, kind: output, shape index: {}]  }
   0x1   :  { %10 = vsyncpa [#allocation6], 0  ;;  %s28_s17 = sshll.u32 %s376_s1, 4  ;;  %s29_s17 = int_to_ptr.hbm [resolvable:$true] %s28_s17 }
   0x2   :  { %11 = vsyncpa [#allocation4], 0  ;;  %s328_s18 = smov [#allocation5]   ;;  %s17_s22 = sshll.u32 %s375_s0, 4  ;;  %s18_s22 = int_to_ptr.hbm [resolvable:$true] %s17_s22 }
   0x3   :  { %s30_s19 = sshll.u32 %s328_s18, 4  ;;  %s329_s23 = smov [#allocation2]   ;;  %s31_s19 = int_to_ptr.vmem [resolvable:$true] %s30_s19 }
   0x4   :  { %33 = dma.hbm_to_vmem [thread:$0]  %s29_s17, 128, %s31_s19, [#allocation6]  }
   0x5   :  { %s19_s24 = sshll.u32 %s329_s23, 4  ;;  %s38_s27 = sshll.u32 %s377_s2, 4  ;;  %s20_s24 = int_to_ptr.vmem [resolvable:$true] %s19_s24  ;;  %s39_s27 = int_to_ptr.hbm [resolvable:$true] %s38_s27 }
   0x6   :  { %22 = dma.hbm_to_vmem [thread:$0]  %s18_s22, 128, %s20_s24, [#allocation3]  }
   0x7   :  { %s330_s1 = smov [#allocation7]   ;;  %s331_s29 = smov 128  }
   0x8   :  { %s40_s28 = sshll.u32 %s330_s1, 4  ;;  %s332_s30 = smov 8   ;;  %s41_s28 = int_to_ptr.vmem [resolvable:$true] %s40_s28 }
   0x9   :  { %46 = dma.hbm_to_vmem [thread:$0]  %s39_s27, 2048, %s41_s28, [#allocation6], %s331_s29, %s331_s29, %s332_s30  }
   0xa   :  { %322 = dma.done.wait [#allocation3], 128  }
   0xb   :  { %323 = vsyncadd [#allocation3], 4294967168 }
   0xc   :  { %324 = dma.done.wait [#allocation6], 2176  }
   0xd   :  { %325 = vsyncadd [#allocation6], 4294965120  ;;  %v78_v0 = vld [vmem:[#allocation7 + $0x78] sm:$0xff]  ;;  %v77_v1 = vld [vmem:[#allocation7 + $0x70] sm:$0xff]  ;;  %v153_v43 = vlaneseq  ;;  %vm159_vm6 = vcmask 64512   ;;  %vm176_vm8 = vcmask 7168  }
   0xe   :  { %83 = vmatpush.xpose.msra.mxu0 %v78_v0  ;;  %v76_v2 = vld [vmem:[#allocation7 + $0x68] sm:$0xff]  ;;  %v75_v3 = vld [vmem:[#allocation7 + $0x60] sm:$0xff]  ;;  %v74_v4 = vld [vmem:[#allocation7 + $0x58] sm:$0xff]  ;;  %v333_v62 = vmov 8.0   ;;  %s204_s7 = sshll.u32 %s379_s4, 4  ;;  %s334_s11 = smov [#allocation8]   ;;  %s205_s7 = int_to_ptr.hbm [resolvable:$true] %s204_s7 }
   0xf   :  { %v73_v5 = vld [vmem:[#allocation7 + $0x50] sm:$0xff]  ;;  %v72_v6 = vld [vmem:[#allocation7 + $0x48] sm:$0xff]  ;;  %v71_v7 = vld [vmem:[#allocation7 + $0x40] sm:$0xff]  ;;  %v154_v44 = vshrl.u32 %v153_v43, 7  ;;  %v156_v45 = vand.u32 127, %v153_v43 }
  0x10   :  { %v70_v8 = vld [vmem:[#allocation7 + $0x38] sm:$0xff]  ;;  %v69_v9 = vld [vmem:[#allocation7 + $0x30] sm:$0xff]  ;;  %v68_v10 = vld [vmem:[#allocation7 + $0x28] sm:$0xff] }
  0x11   :  { %v67_v11 = vld [vmem:[#allocation7 + $0x20] sm:$0xff]  ;;  %v66_v12 = vld [vmem:[#allocation7 + $0x18] sm:$0xff]  ;;  %v65_v13 = vld [vmem:[#allocation7 + $0x10] sm:$0xff]  ;;  %vm157_vm7 = vcmp.eq.s32.totalorder %v154_v44, %v156_v45 }
  0x12   :  { %84 = vmatpush.xpose.msra.mxu0 %v77_v1  ;;  %v64_v14 = vld [vmem:[#allocation7 + $0x8] sm:$0xff]  ;;  %v63_v15 = vld [vmem:[#allocation7] sm:$0xff]  ;;  %v62_v16 = vld [vmem:[#allocation5] sm:$0xff] }
  0x13   :  { %v227_v17 = vld [vmem:[%s378_s3] ss:$0 sm:$0xff] }
  0x14   :  { %v61_v21 = vld [vmem:[#allocation2] sm:$0xff] }
  0x15   :  { %v118_v22 = vmul.f32 %v61_v21, %v61_v21 }
  0x16   :  { %85 = vmatpush.xpose.msra.mxu0 %v76_v2 }
  0x1a   :  { %86 = vmatpush.xpose.msra.mxu0 %v75_v3 }
  0x1e   :  { %87 = vmatpush.xpose.msra.mxu0 %v74_v4 }
  0x22   :  { %88 = vmatpush.xpose.msra.mxu0 %v73_v5 }
  0x26   :  { %89 = vmatpush.xpose.msra.mxu0 %v72_v6 }
  0x2a   :  { %90 = vmatpush.xpose.msra.mxu0 %v71_v7 }
  0x2e   :  { %91 = vmatpush.xpose.msra.mxu0 %v70_v8 }
  0x32   :  { %92 = vmatpush.xpose.msra.mxu0 %v69_v9 }
  0x36   :  { %93 = vmatpush.xpose.msra.mxu0 %v68_v10 }
  0x3a   :  { %94 = vmatpush.xpose.msra.mxu0 %v67_v11 }
  0x3e   :  { %95 = vmatpush.xpose.msra.mxu0 %v66_v12 }
  0x42   :  { %96 = vmatpush.xpose.msra.mxu0 %v65_v13 }
  0x46   :  { %97 = vmatpush.xpose.msra.mxu0 %v64_v14 }
  0x4a   :  { %98 = vmatpush.xpose.msra.mxu0 %v63_v15 }
  0x4d   :  { %99 = vmatmul.f32.vlgmr.msra.gmra.mxu0 %v62_v16 }
  0xca   :  { %v100_v18 = vpop.f32.mrf.mxu0 }
  0xcb   :  { %v101_v19 = vadd.f32 %v227_v17, %v100_v18 }
  0xcd   :  { %v103_v20 = vmul.f32 %v101_v19, %v101_v19 }
  0xcf   :  { %104 = vadd.xlane.f32.xlu0 %v103_v20 }
  0xd7   :  { %119 = vadd.xlane.f32.xlu0 %v118_v22 }
 0x142   :  { %v105_v23 = vpop.xlane.xlu0 %104 }
 0x143   :  { %v106_v24 = vmax.f32 %v105_v23, 1e-24 }
 0x145   :  { %228 = vrsqrt.f32 %v106_v24  ;;  %vm113_vm1 = vweird.f32 %v106_v24 }
 0x14a   :  { %v120_v25 = vpop.xlane.xlu0 %119 }
 0x14b   :  { %v229_v26 = vpop.eup %228  ;;  %v121_v27 = vmax.f32 %v120_v25, 1e-24 }
 0x14c   :  { %v108_v28 = vmul.f32 %v229_v26, %v106_v24  ;;  %vm114_vm0 = vweird.f32 %v229_v26 }
 0x14d   :  { %230 = vrsqrt.f32 %v121_v27  ;;  %vm115_vm2 = vmor %vm113_vm1, %vm114_vm0  ;;  %vm128_vm4 = vweird.f32 %v121_v27 }
 0x14e   :  { %v109_v29 = vmul.f32 %v229_v26, %v108_v28 }
 0x150   :  { %v110_v30 = vmul.f32 0.5, %v109_v29 }
 0x152   :  { %v111_v31 = vsub.f32 1.5, %v110_v30 }
 0x153   :  { %v231_v32 = vpop.eup %230 }
 0x154   :  { %v123_v33 = vmul.f32 %v231_v32, %v121_v27  ;;  %v112_v34 = vmul.f32 %v229_v26, %v111_v31  ;;  %vm129_vm3 = vweird.f32 %v231_v32 }
 0x155   :  { %vm130_vm5 = vmor %vm128_vm4, %vm129_vm3 }
 0x156   :  { %v124_v35 = vmul.f32 %v231_v32, %v123_v33  ;;  %v116_v36 = vsel %vm115_vm2, %v229_v26, %v112_v34 }
 0x157   :  { %v117_v37 = vmul.f32 %v116_v36, %v101_v19 }
 0x158   :  { %v125_v38 = vmul.f32 0.5, %v124_v35 }
 0x159   :  { %148 = vmatpush.xpose.msra.mxu1 %v117_v37 }
 0x15a   :  { %v126_v39 = vsub.f32 1.5, %v125_v38 }
 0x15c   :  { %v127_v40 = vmul.f32 %v231_v32, %v126_v39 }
 0x15e   :  { %v131_v41 = vsel %vm130_vm5, %v231_v32, %v127_v40 }
 0x15f   :  { %v132_v42 = vmul.f32 %v131_v41, %v61_v21 }
 0x161   :  { %149 = vmatmul.f32.vlgmr.msra.gmra.mxu1 %v132_v42 }
 0x1de   :  { %v150_v46 = vpop.f32.mrf.mxu1 }
 0x1df   :  { %v163_v47 = vsel %vm159_vm6, %v150_v46, -inf  ;;  %v158_v48 = vsel %vm157_vm7, %v150_v46, 0.0 }
 0x1e0   :  { %164 = vmax.xlane.f32.xlu1 %v163_v47  ;;  %v160_v49 = vsel %vm159_vm6, %v158_v48, 0.0 }
 0x1e1   :  { %161 = vadd.xlane.f32.xlu2 %v160_v49 }
 0x253   :  { %v165_v50 = vpop.xlane.xlu1 %164 }
 0x254   :  { %v166_v51 = vsub.f32 %v150_v46, %v165_v50  ;;  %v162_v59 = vpop.xlane.xlu2 %161 }
 0x256   :  { %v167_v52 = vmul.f32 1.442695, %v166_v51 }
 0x258   :  { %232 = vpow2.f32 %v167_v52 }
 0x25e   :  { %v233_v53 = vpop.eup %232 }
 0x25f   :  { %v169_v54 = vsel %vm159_vm6, %v233_v53, 0.0 }
 0x260   :  { %170 = vadd.xlane.f32.xlu1 %v169_v54 }
 0x2d3   :  { %v171_v55 = vpop.xlane.xlu1 %170 }
 0x2d4   :  { %234 = vlog2.f32 %v171_v55 }
 0x2d5   :  { %236 = vrcp.f32 %v333_v62 }
 0x2da   :  { %v235_v56 = vpop.eup %234 }
 0x2db   :  { %v173_v57 = vmul.f32 0.6931472, %v235_v56  ;;  %v237_v63 = vpop.eup %236 }
 0x2dc   :  { %v188_v0 = vmul.f32 8.0, %v237_v63  ;;  %vm192_vm9 = vweird.f32 %v237_v63 }
 0x2dd   :  { %v174_v58 = vadd.f32 %v173_v57, %v165_v50 }
 0x2de   :  { %v189_v1 = vsub.f32 1.0, %v188_v0 }
 0x2df   :  { %v175_v60 = vsub.f32 %v162_v59, %v174_v58 }
 0x2e0   :  { %v190_v5 = vmul.f32 %v237_v63, %v189_v1 }
 0x2e1   :  { %v177_v61 = vsel %vm176_vm8, %v175_v60, 0.0 }
 0x2e2   :  { %178 = vadd.xlane.f32.xlu2 %v177_v61  ;;  %v191_v8 = vadd.f32 %v237_v63, %v190_v5 }
 0x2e4   :  { %v193_v11 = vsel %vm192_vm9, %v237_v63, %v191_v8 }
 0x355   :  { %v179_v2 = vpop.xlane.xlu2 %178 }
 0x356   :  { %v180_v3 = vrot.slane %v179_v2, 4 }
 0x358   :  { %v181_v4 = vadd.f32 %v180_v3, %v179_v2 }
 0x35a   :  { %v182_v6 = vrot.slane %v181_v4, 2 }
 0x35c   :  { %v183_v7 = vadd.f32 %v182_v6, %v181_v4 }
 0x35e   :  { %v184_v9 = vrot.slane %v183_v7, 1 }
 0x360   :  { %v185_v10 = vadd.f32 %v184_v9, %v183_v7 }
 0x362   :  { %216 = vpush %v185_v10 }
 0x363   :  { %218 = vpush %v193_v11 }
 0x393   :  { %s217_s3 = spop %216 }
 0x394   :  { %s219_s8 = spop %218 }
 0x395   :  { %s195_s9 = smul.f32 %s219_s8, %s217_s3 }
 0x397   :  { %s196_s10 = ssub.f32 0.0, %s195_s9 }
 0x399   :  { %198 = sst [smem:[#allocation8]] %s196_s10 }
 0x39a   :  { %207 = dma.smem_to_hbm %s334_s11, 16, %s205_s7, [#allocation4]  }
 0x39b   :  { %326 = dma.done.wait [#allocation4], 16  }
 0x39c   :  { %327 = vsyncadd [#allocation4], 4294967280 }
 0x39d   :  { %212 = sfence }
 0x39e   :  { %213 = vsyncpa [#allocation3], 1 }
 0x39f   :  { %214 = vsyncpa [#allocation6], 1 }
 0x3a0   :  { %215 = vsyncpa [#allocation4], 1 }

</bundles_post_ra>
